<compile_context>
chip_gen: v6e
topology: v6e:2x2x1
jax: 0.10.0
libtpu: 0.0.40
codegen_flags: <defaults>
</compile_context>

<pallas_src>
import jax
import jax.numpy as jnp
from jax.experimental import pallas as pl
from jax.experimental.pallas import tpu as pltpu

LANE = 128


def _round_up(x, m):
    return ((x + m - 1) // m) * m


def _vmem_limit_bytes():
    """Generation-aware scoped-VMEM limit (v7x: 64 MiB physical; v5e/v6e: 128 MiB)."""
    default_cap = 64 * 1024 * 1024
    try:
        cap = int(getattr(pltpu.get_tpu_info(), "vmem_capacity_bytes", default_cap))
    except Exception:
        cap = default_cap
    # >=16 MiB headroom below physical, never more than 100 MiB.
    return int(min(max(cap - 16 * 1024 * 1024, 32 * 1024 * 1024),
                   100 * 1024 * 1024))


def _largest_divisor_leq(n, cap):
    cap = max(1, cap)
    best = 1
    for d in range(1, n + 1):
        if n % d == 0 and d <= cap:
            best = d
    return best


# ----------------------------------------------------------------------------
# Kernel 1: im2col 3x3 conv (single bf16 matmul, K = 9*Cin) plus per-(n, tile)
#           per-channel sum / sum-of-squares for training-mode BatchNorm.
# Grid: (N, H//th) -- both axes parallel; each step writes its own stats row.
# ----------------------------------------------------------------------------
def conv_im2col_stats_kernel(p_ref, w_ref, y_ref, sum_ref, ssq_ref):
    # p_ref  : (1, th, W, K)    bf16 im2col patches for this row tile
    # w_ref  : (K, Cout)        bf16 reshaped conv weights
    # y_ref  : (1, th, W, Cout) bf16 conv output tile (channel-unpadded)
    # sum_ref/ssq_ref : (1, 1, 1, Cout) f32 partial stats for this (n, tile)
    th, W, K = p_ref.shape[1], p_ref.shape[2], p_ref.shape[3]
    Cout = w_ref.shape[1]

    lhs = p_ref[...].reshape(th * W, K)
    # One MXU matmul per tile, f32 accumulation (MRB-friendly on v7x).
    acc = jnp.dot(lhs, w_ref[...], preferred_element_type=jnp.float32)

    # Conv bias intentionally omitted -- cancelled by the BN mean subtraction.
    y_ref[...] = acc.reshape(1, th, W, Cout).astype(y_ref.dtype)
    sum_ref[...] = jnp.sum(acc, axis=0).reshape(1, 1, 1, Cout)
    ssq_ref[...] = jnp.sum(acc * acc, axis=0).reshape(1, 1, 1, Cout)


# ----------------------------------------------------------------------------
# Kernel 2: fused BatchNorm affine (precomputed per-channel scale/shift) + PReLU.
# Grid: (N, H//th), fully parallel.  Channel-unpadded blocks (real data only).
# ----------------------------------------------------------------------------
def bn_prelu_kernel(y_ref, scale_ref, shift_ref, alpha_ref, o_ref):
    C = y_ref.shape[3]
    z = (y_ref[...].astype(jnp.float32) * scale_ref[...].reshape(1, 1, 1, C)
         + shift_ref[...].reshape(1, 1, 1, C))
    a = alpha_ref[0]  # scalar PReLU weight from SMEM
    o_ref[...] = jnp.where(z > 0, z, a * z).astype(o_ref.dtype)


# ----------------------------------------------------------------------------
# Wrapper: layout conversion, im2col packing, BN statistics folding.
# ----------------------------------------------------------------------------
def conv_block(x_nchw, weight_oihw, bias, gamma, beta, alpha, eps=1e-5):
    # `bias` accepted for API parity with nn.Conv2d(..., bias=True) but unused:
    # a per-channel bias before training-mode BatchNorm is mathematically
    # cancelled by the batch-mean subtraction, so the output is unchanged.
    del bias

    N, Cin, H, W = x_nchw.shape
    Cout = weight_oihw.shape[0]
    K = 9 * Cin  # im2col contraction depth (kept unpadded -> minimal HBM)

    vmem_limit = _vmem_limit_bytes()
    budget = vmem_limit // 2  # leave headroom for double-buffering slack
    Kp = _round_up(K, LANE)       # VMEM lane-padded widths (footprint estimate)
    Cp = _round_up(Cout, LANE)

    # --- wrapper-side im2col (cheap for small Cin; XLA fuses cast+pad+slices) ---
    x_nhwc = jnp.transpose(x_nchw, (0, 2, 3, 1)).astype(jnp.bfloat16)
    xpad = jnp.pad(x_nhwc, ((0, 0), (1, 1), (1, 1), (0, 0)))
    patches = jnp.concatenate(
        [xpad[:, dy:dy + H, dx:dx + W, :] for dy in range(3) for dx in range(3)],
        axis=-1)  # (N, H, W, 9*Cin), tap order (dy, dx, c)

    # Weights: OIHW -> (3, 3, Cin, Cout) -> (9*Cin, Cout), matching tap order.
    w2 = jnp.transpose(weight_oihw, (2, 3, 1, 0)).reshape(K, Cout).astype(jnp.bfloat16)

    # --- pass-1 row-tile size from the per-generation VMEM budget ---
    row_bytes_p1 = W * (6 * Kp + 12 * Cp)        # in(x2) + lhs copy + out(x2) + f32 temps
    th1 = _largest_divisor_leq(H, budget // row_bytes_p1)
    n_t1 = H // th1

    y, psum, pssq = pl.pallas_call(
        conv_im2col_stats_kernel,
        out_shape=(
            jax.ShapeDtypeStruct((N, H, W, Cout), jnp.bfloat16),
            jax.ShapeDtypeStruct((N, n_t1, 1, Cout), jnp.float32),
            jax.ShapeDtypeStruct((N, n_t1, 1, Cout), jnp.float32),
        ),
        grid_spec=pltpu.PrefetchScalarGridSpec(
            num_scalar_prefetch=0,
            grid=(N, n_t1),
            in_specs=[
                pl.BlockSpec((1, th1, W, K), lambda n, i: (n, i, 0, 0)),
                pl.BlockSpec((K, Cout), lambda n, i: (0, 0)),
            ],
            out_specs=(
                pl.BlockSpec((1, th1, W, Cout), lambda n, i: (n, i, 0, 0)),
                pl.BlockSpec((1, 1, 1, Cout), lambda n, i: (n, i, 0, 0)),
                pl.BlockSpec((1, 1, 1, Cout), lambda n, i: (n, i, 0, 0)),
            ),
        ),
        compiler_params=pltpu.CompilerParams(
            dimension_semantics=("parallel", "parallel"),
            vmem_limit_bytes=vmem_limit),
    )(patches, w2)

    # Fold training-mode BN batch statistics (biased variance) into scale/shift.
    count = N * H * W
    csum = jnp.sum(psum, axis=(0, 1, 2))                  # (Cout,)
    cssq = jnp.sum(pssq, axis=(0, 1, 2))
    mean = csum / count
    var = jnp.maximum(cssq / count - mean * mean, 0.0)    # guard cancellation
    invstd = jax.lax.rsqrt(var + eps)

    scale = (gamma.astype(jnp.float32) * invstd).reshape(1, Cout)
    shift = (beta.astype(jnp.float32) - mean * gamma.astype(jnp.float32) * invstd
             ).reshape(1, Cout)
    alpha_arr = jnp.asarray(alpha, jnp.float32).reshape(1)

    # --- pass 2: BN affine + PReLU, row-tiled, channel-unpadded blocks ---
    row_bytes_p2 = W * Cp * 20                   # bf16 in(x2) + f32 out(x2) + temps
    th2 = _largest_divisor_leq(H, budget // row_bytes_p2)

    out = pl.pallas_call(
        bn_prelu_kernel,
        out_shape=jax.ShapeDtypeStruct((N, H, W, Cout), jnp.float32),
        grid_spec=pltpu.PrefetchScalarGridSpec(
            num_scalar_prefetch=0,
            grid=(N, H // th2),
            in_specs=[
                pl.BlockSpec((1, th2, W, Cout), lambda n, i: (n, i, 0, 0)),
                pl.BlockSpec((1, Cout), lambda n, i: (0, 0)),
                pl.BlockSpec((1, Cout), lambda n, i: (0, 0)),
                pl.BlockSpec(memory_space=pltpu.MemorySpace.SMEM),
            ],
            out_specs=pl.BlockSpec((1, th2, W, Cout), lambda n, i: (n, i, 0, 0)),
        ),
        compiler_params=pltpu.CompilerParams(
            dimension_semantics=("parallel", "parallel"),
            vmem_limit_bytes=vmem_limit),
    )(y, scale, shift, alpha_arr)

    # No channel slice needed anymore; only the NHWC -> NCHW layout transpose.
    return jnp.transpose(out, (0, 3, 1, 2))


# ----------------------------------------------------------------------------
# Pure-JAX reference (PyTorch semantics, f32, bias included) for sanity check.
# ----------------------------------------------------------------------------
def ref_conv_block(x, w, b, gamma, beta, alpha, eps=1e-5):
    y = jax.lax.conv_general_dilated(
        x, w, window_strides=(1, 1), padding=((1, 1), (1, 1)),
        dimension_numbers=("NCHW", "OIHW", "NCHW"))
    y = y + b[None, :, None, None]
    mean = y.mean(axis=(0, 2, 3))
    var = y.var(axis=(0, 2, 3))  # biased variance, as in BN training forward
    yn = (y - mean[None, :, None, None]) / jnp.sqrt(var[None, :, None, None] + eps)
    yn = yn * gamma[None, :, None, None] + beta[None, :, None, None]
    return jnp.where(yn > 0, yn, alpha * yn)


if __name__ == "__main__":
    key = jax.random.PRNGKey(0)
    k_x, k_w, k_b, k_g, k_be = jax.random.split(key, 5)

    # Small shapes consistent with the module (ConvBlock(3, 8) on 16x16 images).
    N, Cin, Cout, H, W = 2, 3, 8, 16, 16
    x = jax.random.normal(k_x, (N, Cin, H, W), dtype=jnp.float32)
    weight = jax.random.normal(k_w, (Cout, Cin, 3, 3), dtype=jnp.float32) * 0.1
    bias = jax.random.normal(k_b, (Cout,), dtype=jnp.float32) * 0.1
    gamma = 1.0 + 0.1 * jax.random.normal(k_g, (Cout,), dtype=jnp.float32)
    beta = 0.1 * jax.random.normal(k_be, (Cout,), dtype=jnp.float32)
    alpha = 0.25  # PReLU default init

    out = conv_block(x, weight, bias, gamma, beta, alpha)
    out = jax.block_until_ready(out)

    ref = ref_conv_block(x, weight, bias, gamma, beta, alpha)
    assert out.shape == (N, Cout, H, W)
    max_err = jnp.max(jnp.abs(out - ref))
    assert jnp.allclose(out, ref, rtol=5e-2, atol=5e-2), \
        f"mismatch vs reference (max abs err = {max_err})"

    print("KERNEL_OK")
</pallas_src>

<mosaic_0001>
module attributes {stable_mosaic.version = 11 : i64} {
  func.func @conv_im2col_stats_kernel(%arg0: i32, %arg1: i32, %arg2: memref<1x16x16x27xbf16, #tpu.memory_space<vmem>>, %arg3: memref<27x8xbf16, #tpu.memory_space<vmem>>, %arg4: memref<1x16x16x8xbf16, #tpu.memory_space<vmem>>, %arg5: memref<1x1x1x8xf32, #tpu.memory_space<vmem>>, %arg6: memref<1x1x1x8xf32, #tpu.memory_space<vmem>>) attributes {dimension_semantics = [#tpu.dimension_semantics<parallel>, #tpu.dimension_semantics<parallel>], iteration_bounds = array<i64: 2, 1>, scalar_prefetch = 0 : i64, scratch_operands = 0 : i64, tpu.core_type = #tpu.core_type<tc>, window_params = [{transform_indices = @transform_0, window_bounds = array<i64: 1, 16, 16, 27>}, {pipeline_mode = #tpu.pipeline_mode<synchronous>, transform_indices = @transform_1, window_bounds = array<i64: 27, 8>}, {transform_indices = @transform_2, window_bounds = array<i64: 1, 16, 16, 8>}, {transform_indices = @transform_3, window_bounds = array<i64: 1, 1, 1, 8>}, {transform_indices = @transform_4, window_bounds = array<i64: 1, 1, 1, 8>}]} {
    %c0 = arith.constant 0 : index
    %c0_0 = arith.constant 0 : index
    %c0_1 = arith.constant 0 : index
    %c0_2 = arith.constant 0 : index
    %0 = vector.load %arg2[%c0, %c0_0, %c0_1, %c0_2] : memref<1x16x16x27xbf16, #tpu.memory_space<vmem>>, vector<1x16x16x27xbf16>
    %1 = vector.shape_cast %0 : vector<1x16x16x27xbf16> to vector<256x27xbf16>
    %c0_3 = arith.constant 0 : index
    %c0_4 = arith.constant 0 : index
    %2 = vector.load %arg3[%c0_3, %c0_4] : memref<27x8xbf16, #tpu.memory_space<vmem>>, vector<27x8xbf16>
    %cst = arith.constant dense<0.000000e+00> : vector<256x8xf32>
    %3 = tpu.matmul %1, %2, %cst {dimension_numbers = #tpu.dot_dimension_numbers<[1], [0], [0], [1], [0, 0, 1, 1], [], []>} : vector<256x27xbf16>, vector<27x8xbf16>, vector<256x8xf32> -> vector<256x8xf32>
    %4 = vector.shape_cast %3 : vector<256x8xf32> to vector<1x16x16x8xf32>
    %5 = arith.truncf %4 : vector<1x16x16x8xf32> to vector<1x16x16x8xbf16>
    %c0_5 = arith.constant 0 : index
    %c0_6 = arith.constant 0 : index
    %c0_7 = arith.constant 0 : index
    %c0_8 = arith.constant 0 : index
    %6 = vector.load %arg4[%c0_5, %c0_6, %c0_7, %c0_8] : memref<1x16x16x8xbf16, #tpu.memory_space<vmem>>, vector<1x16x16x8xbf16>
    tpu.vector_store %arg4[%c0_5, %c0_6, %c0_7, %c0_8], %5 {strides = array<i32>} : memref<1x16x16x8xbf16, #tpu.memory_space<vmem>>, vector<1x16x16x8xbf16>,
    %cst_9 = arith.constant dense<0.000000e+00> : vector<8xf32>
    %7 = vector.multi_reduction <add>, %3, %cst_9 [0] : vector<256x8xf32> to vector<8xf32>
    %8 = vector.shape_cast %7 : vector<8xf32> to vector<1x1x1x8xf32>
    %c0_10 = arith.constant 0 : index
    %c0_11 = arith.constant 0 : index
    %c0_12 = arith.constant 0 : index
    %c0_13 = arith.constant 0 : index
    %9 = vector.load %arg5[%c0_10, %c0_11, %c0_12, %c0_13] : memref<1x1x1x8xf32, #tpu.memory_space<vmem>>, vector<1x1x1x8xf32>
    tpu.vector_store %arg5[%c0_10, %c0_11, %c0_12, %c0_13], %8 {strides = array<i32>} : memref<1x1x1x8xf32, #tpu.memory_space<vmem>>, vector<1x1x1x8xf32>,
    %10 = arith.mulf %3, %3 : vector<256x8xf32>
    %cst_14 = arith.constant dense<0.000000e+00> : vector<8xf32>
    %11 = vector.multi_reduction <add>, %10, %cst_14 [0] : vector<256x8xf32> to vector<8xf32>
    %12 = vector.shape_cast %11 : vector<8xf32> to vector<1x1x1x8xf32>
    %c0_15 = arith.constant 0 : index
    %c0_16 = arith.constant 0 : index
    %c0_17 = arith.constant 0 : index
    %c0_18 = arith.constant 0 : index
    %13 = vector.load %arg6[%c0_15, %c0_16, %c0_17, %c0_18] : memref<1x1x1x8xf32, #tpu.memory_space<vmem>>, vector<1x1x1x8xf32>
    tpu.vector_store %arg6[%c0_15, %c0_16, %c0_17, %c0_18], %12 {strides = array<i32>} : memref<1x1x1x8xf32, #tpu.memory_space<vmem>>, vector<1x1x1x8xf32>,
    return
  }
  func.func @transform_0(%arg0: i32, %arg1: i32) -> (i32, i32, i32, i32) {
    %c0_i32 = arith.constant 0 : i32
    %c0_i32_0 = arith.constant 0 : i32
    %c0_i32_1 = arith.constant 0 : i32
    return %arg0, %arg1, %c0_i32, %c0_i32_0 : i32, i32, i32, i32
  }
  func.func @transform_1(%arg0: i32, %arg1: i32) -> (i32, i32) {
    %c0_i32 = arith.constant 0 : i32
    %c0_i32_0 = arith.constant 0 : i32
    %c0_i32_1 = arith.constant 0 : i32
    return %c0_i32, %c0_i32_0 : i32, i32
  }
  func.func @transform_2(%arg0: i32, %arg1: i32) -> (i32, i32, i32, i32) {
    %c0_i32 = arith.constant 0 : i32
    %c0_i32_0 = arith.constant 0 : i32
    %c0_i32_1 = arith.constant 0 : i32
    return %arg0, %arg1, %c0_i32, %c0_i32_0 : i32, i32, i32, i32
  }
  func.func @transform_3(%arg0: i32, %arg1: i32) -> (i32, i32, i32, i32) {
    %c0_i32 = arith.constant 0 : i32
    %c0_i32_0 = arith.constant 0 : i32
    %c0_i32_1 = arith.constant 0 : i32
    return %arg0, %arg1, %c0_i32, %c0_i32_0 : i32, i32, i32, i32
  }
  func.func @transform_4(%arg0: i32, %arg1: i32) -> (i32, i32, i32, i32) {
    %c0_i32 = arith.constant 0 : i32
    %c0_i32_0 = arith.constant 0 : i32
    %c0_i32_1 = arith.constant 0 : i32
    return %arg0, %arg1, %c0_i32, %c0_i32_0 : i32, i32, i32, i32
  }
}

</mosaic_0001>

<bundles_post_ra>
// kernel: tpu_custom_call.1
= control target key start
LH: loop header
LB: loop body
LE: loop exit
PB: predicated region body
PF: predicated region fallthrough
CT: control target
= control target key end

     0   :  { %10 = vsyncpa [#allocation3], 0  ;;  %s2046_s0 = inlined_call_operand.hbm [shape: bf16[2,16,16,27], index: 0, kind: input, shape index: {}]   ;;  %s2047_s1 = inlined_call_operand.vmem [shape: bf16[27,8], index: 1, kind: input, shape index: {}]   ;;  %s2048_s2 = inlined_call_operand.vmem [shape: bf16[2,16,16,8], index: 2, kind: output, shape index: {0}]   ;;  %s2049_s3 = inlined_call_operand.hbm [shape: f32[2,1,1,8], index: 3, kind: output, shape index: {1}]   ;;  %s2050_s4 = inlined_call_operand.hbm [shape: f32[2,1,1,8], index: 4, kind: output, shape index: {2}]  }
   0x1   :  { %12 = vsyncpa [#allocation3 + $0x1], 0 }
   0x2   :  { %13 = vsyncpa [#allocation4], 0 }
   0x3   :  { %15 = vsyncpa [#allocation4 + $0x1], 0 }
   0x4   :  { %16 = vsyncpa [#allocation7], 0 }
   0x5   :  { %18 = vsyncpa [#allocation7 + $0x1], 0  ;;  %s1579_s15 = smov 0   ;;  %s1581_s16 = smov 0  }
   0x6   :  { %s1583_s17 = smov 0   ;;  %s1585_s18 = smov 0  }
   0x7   :  { %s1587_s19 = smov 0   ;;  %s1589_s20 = smov 0  }
   0x8 LB: > { %s1147_s21 = sadd.s32 4294967295, %s1546_s20   ;;  %s1148_s22 = sadd.s32 4294967294, %s1546_s20   ;;  %s1546_s20 = sphi %s1589_s20, %s24_s20   ;;  %s1542_s19 = sphi %s1587_s19, %s2061_s19   ;;  %s1538_s18 = sphi %s1585_s18, %s2060_s18   ;;  %s1534_s17 = sphi %s1583_s17, %s2059_s17   ;;  %s1530_s16 = sphi %s1581_s16, %s2058_s16   ;;  %s1526_s15 = sphi %s1579_s15, %s2057_s15  }
   0x9   : > { %s36_s23 = sadd.s32 1, %s1542_s19  ;;  %s45_s24 = sadd.s32 1, %s1534_s17 }
   0xa   : > { %p38_p0 = scmp.ge.s32.totalorder %s36_s23, 2  ;;  %p52_p1 = scmp.ne.s32.totalorder %s1534_s17, %s1530_s16 }
   0xb   : > { %p53_p2 = scmp.eq.s32.totalorder %s1546_s20, 0  ;;  %p58_p3 = scmp.ne.s32.totalorder %s1530_s16, %s1526_s15 }
   0xc   : > { %s2063_s23 = smov (%p38_p0, %s36_s23), 0  ;;  %p59_p5 = scmp.eq.s32.totalorder %s1147_s21, 0 }
   0xd   : > { %p1620_p4 = por %p53_p2, %p52_p1  ;;  %s40_s26 = ssub.s32 %s1542_s19, %s2063_s23 }
   0xe   : > { %p133_p6 = scmp.eq.s32.totalorder %s1147_s21, 1  ;;  %p43_p7 = scmp.eq.s32.totalorder %s40_s26, 0 }
   0xf   : > { %p1626_p8 = por %p59_p5, %p58_p3  ;;  %p139_p10 = scmp.eq.s32.totalorder %s1148_s22, 1 }
  0x10   : > { %p1630_p9 = por %p133_p6, %p52_p1  ;;  %p1337_p13 = scmp.lt.s32.totalorder %s1546_s20, 2 }
  0x11   : > { %s1635_s29 = scalar_select %p43_p7, %s1534_s17, %s45_s24  }
  0x12   : > { %p1637_p11 = por %p139_p10, %p58_p3  ;;  %s190_s5 = sand.u32 1, %s1534_s17  }
  0x13   : > { %s1151_s6 = sshll.u32 %s190_s5, 7  ;;  %s1228_s7 = sshll.u32 %s1542_s19, 11 }
  0x14   : > { %s203_s10 = scalar_lea.hbm %s2046_s0, %s1228_s7  ;;  %s194_s11 = scalar_lea.vmem [#allocation2], %s1151_s6 }
  0x15   : > { %s204_s12 = sshll.u32 %s194_s11, 4  ;;  %p1650_p0 = pnand %p1337_p13, %p1620_p4  ;;  %s205_s12 = int_to_ptr.vmem [resolvable:$true] %s204_s12 }
  0x16   : > { %p1154_p1 = scmp.ge.s32.totalorder %s1546_s20, 1  ;;  %s191_s14 = scalar_lea.sflag [#allocation3], %s190_s5 }
  0x17   : > { %p1410_p2 = pneg %p1650_p0  ;;  %s1421_s21 = scalar_lea.vmem %s205_s12, 2048 }
  0x18   : > { %p1422_p3 = scmp.ne.s32.totalorder %s205_s12, %s1421_s21  ;;  %s1548_s22 = smov [#allocation2]  }
  0x19   : > { %s1426_s24 = sshll.u32 %s1548_s22, 4  ;;  %s1427_s24 = int_to_ptr.vmem [resolvable:$false] %s1426_s24 }
  0x1a   : > { %p1424_p5 = pnand %p1422_p3, %p1410_p2  ;;  %s1428_s26 = scalar_lea.vmem %s1427_s24, 4096 }
  0x1b   : > { %p1429_p7 = scmp.lt.s32.totalorder %s205_s12, %s1427_s24  ;;  %p1430_p10 = scmp.lt.s32.totalorder %s1428_s26, %s1421_s21 }
  0x1c   : > { %p1425_p6 = pneg %p1424_p5 }
  0x1d   : > { %p1431_p12 = por %p1430_p10, %p1429_p7 }
  0x1f   : > { %p1432_p4 = pnand %p1431_p12, %p1425_p6 }
  0x21   : > { %1435 = shalt.err (!%p1432_p4)
}
  0x22   : > { %s1549_s25 = smov 64   ;;  %s1550_s5 = smov 4  }
  0x23   : > { %1329 = dma.hbm_to_vmem [thread:$0]  (!%p1650_p0), %s203_s10, 2048, %s205_s12, %s191_s14, %s1549_s25, %s1549_s25, %s1550_s5  }
  0x24   : > { %p212_p13 = scmp.lt.s32.totalorder %s1546_s20, 3 }
  0x26   : > { %p213_p2 = pnand %p1154_p1, %p212_p13 }
  0x27   : > { %s1663_s6 = sand.u32 (!%p213_p2), 1, %s1530_s16  }
  0x28   : > { %216 = sbr.rel (%p213_p2) target bundleno = 368 (0x170), region = 28  ;;  %s1155_s7 = sshll.u32 (!%p213_p2), %s1663_s6, 7 }
  0x29   : > { %s219_s8 = scalar_lea.sflag (!%p213_p2), [#allocation3], %s1663_s6  ;;  %s1667_s9 = scalar_lea.vmem (!%p213_p2), [#allocation2], %s1155_s7 }
  0x2d   : > { %1513 = dma.done.wait (%p1626_p8), %s219_s8, 2048  }
  0x2e   : > { %1515 = vsyncadd (%p1626_p8), %s219_s8, 4294965248  ;;  %vm449_vm0 = vcmask 1044480   ;;  %vm450_vm1 = vcmask 1045504   ;;  %v1551_v0 = vmov 65535   ;;  %v1390_v3 = vld [vmem:[%s2047_s1 + $0x8] sm:$0x3f]  }
  0x2f   : > { %v451_v1 = vsel %vm449_vm0, 4294967295, %v1551_v0  ;;  %v1391_v4 = vld [vmem:[%s2047_s1] sm:$0xff]   ;;  %vm400_vm2 = vcmask 220160   ;;  %v1393_v7 = vld [vmem:[%s1667_s9 + $0x8] sm:$0xff]   ;;  %v1394_v8 = vld [vmem:[%s1667_s9 + $0x10] sm:$0xff]   ;;  %p262_p8 = scmp.lt.s32.totalorder %s1538_s18, 1 }
  0x30   : > { %v452_v2 = vsel %vm450_vm1, %v451_v1, 0  ;;  %v1392_v6 = vld [vmem:[%s1667_s9] sm:$0xff]   ;;  %v1401_v10 = vld [vmem:[%s1667_s9 + $0x48] sm:$0xff]   ;;  %v1402_v11 = vld [vmem:[%s1667_s9 + $0x50] sm:$0xff]   ;;  %vm745_vm3 = vcmask 60416   ;;  %vm778_vm4 = vcmask 64512  }
  0x31   : > { %v454_v5 = vand.u32 %v1390_v3, %v452_v2  ;;  %1284 = vmatprep.mubr.msk.bf16.mxu0 %vm400_vm2, %v1392_v6  ;;  %v1400_v9 = vld [vmem:[%s1667_s9 + $0x40] sm:$0xff]   ;;  %v1395_v12 = vld [vmem:[%s1667_s9 + $0x18] sm:$0xff]   ;;  %v1397_v16 = vld [vmem:[%s1667_s9 + $0x28] sm:$0xff]   ;;  %s263_s27 = scalar_select %p262_p8, %s1538_s18, 1  ;;  %vm848_vm5 = vcmask 57344  }
  0x32   : > { %1300 = vmatprep.mubr.msk.bf16.mxu1 %vm400_vm2, %v1400_v9  ;;  %v1396_v13 = vld [vmem:[%s1667_s9 + $0x20] sm:$0xff]   ;;  %v1403_v14 = vld [vmem:[%s1667_s9 + $0x58] sm:$0xff]   ;;  %v1398_v17 = vld [vmem:[%s1667_s9 + $0x30] sm:$0xff]   ;;  %s1224_s26 = sshll.u32 %s1538_s18, 4  ;;  %s253_s25 = scalar_lea.vmem [#allocation5], %s1663_s6 }
  0x33   : > { %1280 = vmatprep.subr.bf16.mxu0 %v454_v5  ;;  %1316 = vmatprep.subr.bf16.mxu1 %v454_v5  ;;  %v1404_v15 = vld [vmem:[%s1667_s9 + $0x60] sm:$0xff]   ;;  %v1405_v18 = vld [vmem:[%s1667_s9 + $0x68] sm:$0xff]   ;;  %v1406_v19 = vld [vmem:[%s1667_s9 + $0x70] sm:$0xff]   ;;  %s1229_s14 = sshll.u32 %s263_s27, 7  ;;  %s984_s5 = sshll.u32 %s253_s25, 4  ;;  %s1968_s5 = int_to_ptr.vmem [resolvable:$true] %s984_s5 }
  0x34   : > { %1281 = vmatpush3.bf16.msra.mxu0 %v454_v5  ;;  %1318 = vmatpush3.bf16.msra.mxu1 %v454_v5  ;;  %v1399_v20 = vld [vmem:[%s1667_s9 + $0x38] sm:$0xff]   ;;  %s1716_s24 = scalar_lea.vmem %s2048_s2, %s1229_s14  ;;  %s259_s7 = scalar_lea.vmem [#allocation6], %s1663_s6 }
  0x35   : > { %1282 = vmatprep.subr.bf16.mxu0 %v1391_v4  ;;  %1317 = vmatprep.subr.bf16.mxu1 %v1391_v4  ;;  %v1407_v21 = vld [vmem:[%s1667_s9 + $0x78] sm:$0xff]   ;;  %s998_s8 = sshll.u32 %s259_s7, 4  ;;  %s1966_s11 = scalar_lea.hbm %s2049_s3, %s1224_s26  ;;  %s1976_s8 = int_to_ptr.vmem [resolvable:$true] %s998_s8 }
  0x36   : > { %s1974_s13 = scalar_lea.hbm %s2050_s4, %s1224_s26  ;;  %s963_s27 = scalar_lea.sflag [#allocation4], %s1663_s6 }
  0x37   : > { %s1436_s14 = scalar_lea.vmem %s1968_s5, 16  ;;  %s1552_s21 = smov [#allocation5]  }
  0x38   : > { %1283 = vmatpush3.bf16.msra.mxu0 %v1391_v4  ;;  %1319 = vmatpush3.bf16.msra.mxu1 %v1391_v4  ;;  %p1437_p12 = scmp.ne.s32.totalorder %s1968_s5, %s1436_s14  ;;  %s1440_s22 = sshll.u32 %s1552_s21, 4  ;;  %s1441_s22 = int_to_ptr.vmem [resolvable:$false] %s1440_s22 }
  0x39   : > { %p1443_p3 = scmp.lt.s32.totalorder %s1968_s5, %s1441_s22 }
  0x3a   : > { %p1438_p0 = pnand %p1437_p12, %p1630_p9 }
  0x3b   : > { %1285 = vmatmul.mubr.msk.bf16.vlgmr.msra.gmra.mxu0 %vm400_vm2, %v1393_v7  ;;  %1301 = vmatmul.mubr.msk.bf16.vlgmr.msra.gmra.mxu1 %vm400_vm2, %v1401_v10 }
  0x3c   : > { %1288 = vmatprep.mubr.msk.bf16.mxu0 %vm400_vm2, %v1394_v8  ;;  %1304 = vmatprep.mubr.msk.bf16.mxu1 %vm400_vm2, %v1402_v11  ;;  %p1439_p1 = pneg %p1438_p0 }
  0x43   : > { %1289 = vmatmul.mubr.msk.bf16.gmra.mxu0 %vm400_vm2, %v1395_v12  ;;  %1305 = vmatmul.mubr.msk.bf16.gmra.mxu1 %vm400_vm2, %v1403_v14 }
  0x44   : > { %1292 = vmatprep.mubr.msk.bf16.mxu0 %vm400_vm2, %v1396_v13  ;;  %1308 = vmatprep.mubr.msk.bf16.mxu1 %vm400_vm2, %v1404_v15 }
  0x4b   : > { %1293 = vmatmul.mubr.msk.bf16.gmra.mxu0 %vm400_vm2, %v1397_v16  ;;  %1309 = vmatmul.mubr.msk.bf16.gmra.mxu1 %vm400_vm2, %v1405_v18 }
  0x4c   : > { %1296 = vmatprep.mubr.msk.bf16.mxu0 %vm400_vm2, %v1398_v17  ;;  %1312 = vmatprep.mubr.msk.bf16.mxu1 %vm400_vm2, %v1406_v19 }
  0x53   : > { %1297 = vmatmul.mubr.msk.bf16.gmra.mxu0 %vm400_vm2, %v1399_v20  ;;  %1313 = vmatmul.mubr.msk.bf16.gmra.mxu1 %vm400_vm2, %v1407_v21 }
  0xfb   : > { %v1286_v22 = vpop.f32.mrf.mxu0  ;;  %v1718_v24 = vpop.f32.mrf.mxu1 }
  0xfc   : > { %v1232_v23 = vpack.c.bf16 %v1286_v22, %v1286_v22  ;;  %v1248_v26 = vpack.c.bf16 %v1718_v24, %v1718_v24  ;;  %v852_v34 = vmul.f32 %v1286_v22, %v1286_v22  ;;  %v782_v42 = vsel %vm778_vm4, %v1286_v22, 0.0 }
  0xfd   : > { %v490_v25 = vpop.f32.mrf.mxu0  ;;  %v1724_v28 = vpop.f32.mrf.mxu1 }
  0xfe   : > { %748 = vst.msk [vmem:[%s1716_s24 + $0x8] sm:$0xf] %vm745_vm3, %v1232_v23  ;;  %v1230_v27 = vpack.c.bf16 %v490_v25, %v490_v25  ;;  %764 = vst.msk [vmem:[%s1716_s24 + $0x48] sm:$0xf] %vm745_vm3, %v1248_v26  ;;  %v1246_v30 = vpack.c.bf16 %v1724_v28, %v1724_v28  ;;  %v850_v31 = vmul.f32 %v490_v25, %v490_v25  ;;  %v779_v37 = vsel %vm778_vm4, %v490_v25, 0.0 }
  0xff   : > { %v1287_v29 = vpop.f32.mrf.mxu0  ;;  %v1732_v33 = vpop.f32.mrf.mxu1  ;;  %v885_v55 = vsel %vm778_vm4, %v852_v34, 0.0 }
 0x100   : > { %746 = vst.msk [vmem:[%s1716_s24] sm:$0xf] %vm745_vm3, %v1230_v27  ;;  %v1233_v32 = vpack.c.bf16 %v1287_v29, %v1287_v29  ;;  %762 = vst.msk [vmem:[%s1716_s24 + $0x40] sm:$0xf] %vm745_vm3, %v1246_v30  ;;  %v1249_v36 = vpack.c.bf16 %v1732_v33, %v1732_v33  ;;  %v882_v46 = vsel %vm778_vm4, %v850_v31, 0.0  ;;  %v853_v47 = vmul.f32 %v1287_v29, %v1287_v29 }
 0x101   : > { %v493_v35 = vpop.f32.mrf.mxu0  ;;  %v1742_v41 = vpop.f32.mrf.mxu1  ;;  %v784_v56 = vsel %vm778_vm4, %v1287_v29, 0.0 }
 0x102   : > { %749 = vst.msk [vmem:[%s1716_s24 + $0xc] sm:$0xf] %vm745_vm3, %v1233_v32  ;;  %v1231_v38 = vpack.c.bf16 %v493_v35, %v493_v35  ;;  %v780_v39 = vsel %vm778_vm4, %v493_v35, 0.0  ;;  %v851_v40 = vmul.f32 %v493_v35, %v493_v35  ;;  %765 = vst.msk [vmem:[%s1716_s24 + $0x4c] sm:$0xf] %vm745_vm3, %v1249_v36  ;;  %v1247_v45 = vpack.c.bf16 %v1742_v41, %v1742_v41 }
 0x103   : > { %v781_v43 = vadd.f32 %v780_v39, %v779_v37  ;;  %v1290_v44 = vpop.f32.mrf.mxu0  ;;  %v1753_v50 = vpop.f32.mrf.mxu1  ;;  %v887_v63 = vsel %vm778_vm4, %v853_v47, 0.0 }
 0x104   : > { %747 = vst.msk [vmem:[%s1716_s24 + $0x4] sm:$0xf] %vm745_vm3, %v1231_v38  ;;  %v883_v48 = vsel %vm778_vm4, %v851_v40, 0.0  ;;  %v1236_v49 = vpack.c.bf16 %v1290_v44, %v1290_v44  ;;  %763 = vst.msk [vmem:[%s1716_s24 + $0x44] sm:$0xf] %vm745_vm3, %v1247_v45  ;;  %v1252_v54 = vpack.c.bf16 %v1753_v50, %v1753_v50  ;;  %v856_v3 = vmul.f32 %v1290_v44, %v1290_v44 }
 0x105   : > { %v783_v51 = vadd.f32 %v782_v42, %v781_v43  ;;  %v884_v52 = vadd.f32 %v883_v48, %v882_v46  ;;  %v506_v53 = vpop.f32.mrf.mxu0  ;;  %v1763_v59 = vpop.f32.mrf.mxu1  ;;  %v790_v16 = vsel %vm778_vm4, %v1290_v44, 0.0 }
 0x106   : > { %752 = vst.msk [vmem:[%s1716_s24 + $0x18] sm:$0xf] %vm745_vm3, %v1236_v49  ;;  %v1234_v57 = vpack.c.bf16 %v506_v53, %v506_v53  ;;  %v854_v58 = vmul.f32 %v506_v53, %v506_v53  ;;  %768 = vst.msk [vmem:[%s1716_s24 + $0x58] sm:$0xf] %vm745_vm3, %v1252_v54  ;;  %v786_v0 = vsel %vm778_vm4, %v506_v53, 0.0  ;;  %v1250_v7 = vpack.c.bf16 %v1763_v59, %v1763_v59 }
 0x107   : > { %v886_v60 = vadd.f32 %v885_v55, %v884_v52  ;;  %v785_v61 = vadd.f32 %v784_v56, %v783_v51  ;;  %v1291_v62 = vpop.f32.mrf.mxu0  ;;  %v1771_v2 = vpop.f32.mrf.mxu1  ;;  %v893_v26 = vsel %vm778_vm4, %v856_v3, 0.0 }
 0x108   : > { %750 = vst.msk [vmem:[%s1716_s24 + $0x10] sm:$0xf] %vm745_vm3, %v1234_v57  ;;  %v1237_v1 = vpack.c.bf16 %v1291_v62, %v1291_v62  ;;  %v889_v8 = vsel %vm778_vm4, %v854_v58, 0.0  ;;  %766 = vst.msk [vmem:[%s1716_s24 + $0x50] sm:$0xf] %vm745_vm3, %v1250_v7  ;;  %v857_v17 = vmul.f32 %v1291_v62, %v1291_v62  ;;  %v1253_v25 = vpack.c.bf16 %v1771_v2, %v1771_v2 }
 0x109   : > { %v787_v4 = vadd.f32 %v786_v0, %v785_v61  ;;  %v888_v5 = vadd.f32 %v887_v63, %v886_v60  ;;  %v509_v6 = vpop.f32.mrf.mxu0  ;;  %v1779_v12 = vpop.f32.mrf.mxu1  ;;  %v792_v27 = vsel %vm778_vm4, %v1291_v62, 0.0 }
 0x10a   : > { %753 = vst.msk [vmem:[%s1716_s24 + $0x1c] sm:$0xf] %vm745_vm3, %v1237_v1  ;;  %v1235_v9 = vpack.c.bf16 %v509_v6, %v509_v6  ;;  %v788_v10 = vsel %vm778_vm4, %v509_v6, 0.0  ;;  %v855_v11 = vmul.f32 %v509_v6, %v509_v6  ;;  %769 = vst.msk [vmem:[%s1716_s24 + $0x5c] sm:$0xf] %vm745_vm3, %v1253_v25  ;;  %v895_v36 = vsel %vm778_vm4, %v857_v17, 0.0 }
 0x10b   : > { %v890_v13 = vadd.f32 %v889_v8, %v888_v5  ;;  %v789_v14 = vadd.f32 %v788_v10, %v787_v4  ;;  %v1294_v15 = vpop.f32.mrf.mxu0  ;;  %v1787_v20 = vpop.f32.mrf.mxu1  ;;  %v1251_v45 = vpack.c.bf16 %v1779_v12, %v1779_v12 }
 0x10c   : > { %751 = vst.msk [vmem:[%s1716_s24 + $0x14] sm:$0xf] %vm745_vm3, %v1235_v9  ;;  %v891_v18 = vsel %vm778_vm4, %v855_v11, 0.0  ;;  %v1240_v19 = vpack.c.bf16 %v1294_v15, %v1294_v15  ;;  %v860_v40 = vmul.f32 %v1294_v15, %v1294_v15  ;;  %v798_v55 = vsel %vm778_vm4, %v1294_v15, 0.0 }
 0x10d   : > { %v791_v21 = vadd.f32 %v790_v16, %v789_v14  ;;  %v892_v22 = vadd.f32 %v891_v18, %v890_v13  ;;  %v522_v23 = vpop.f32.mrf.mxu0  ;;  %v1795_v31 = vpop.f32.mrf.mxu1  ;;  %767 = vst.msk [vmem:[%s1716_s24 + $0x54] sm:$0xf] %vm745_vm3, %v1251_v45  ;;  %v1256_v0 = vpack.c.bf16 %v1787_v20, %v1787_v20 }
 0x10e   : > { %756 = vst.msk [vmem:[%s1716_s24 + $0x28] sm:$0xf] %vm745_vm3, %v1240_v19  ;;  %v1238_v29 = vpack.c.bf16 %v522_v23, %v522_v23  ;;  %v858_v30 = vmul.f32 %v522_v23, %v522_v23  ;;  %v794_v37 = vsel %vm778_vm4, %v522_v23, 0.0  ;;  %v901_v1 = vsel %vm778_vm4, %v860_v40, 0.0 }
 0x10f   : > { %v894_v32 = vadd.f32 %v893_v26, %v892_v22  ;;  %v793_v34 = vadd.f32 %v792_v27, %v791_v21  ;;  %v1295_v35 = vpop.f32.mrf.mxu0  ;;  %v1803_v39 = vpop.f32.mrf.mxu1  ;;  %772 = vst.msk [vmem:[%s1716_s24 + $0x68] sm:$0xf] %vm745_vm3, %v1256_v0  ;;  %v1254_v18 = vpack.c.bf16 %v1795_v31, %v1795_v31  ;;  %v869_v0 = vmul.f32 %v1732_v33, %v1732_v33 }
 0x110   : > { %754 = vst.msk [vmem:[%s1716_s24 + $0x20] sm:$0xf] %vm745_vm3, %v1238_v29  ;;  %v1241_v38 = vpack.c.bf16 %v1295_v35, %v1295_v35  ;;  %v897_v46 = vsel %vm778_vm4, %v858_v30, 0.0  ;;  %v861_v56 = vmul.f32 %v1295_v35, %v1295_v35  ;;  %v800_v3 = vsel %vm778_vm4, %v1295_v35, 0.0 }
 0x111   : > { %v795_v42 = vadd.f32 %v794_v37, %v793_v34  ;;  %v896_v43 = vadd.f32 %v895_v36, %v894_v32  ;;  %v525_v44 = vpop.f32.mrf.mxu0  ;;  %v1811_v51 = vpop.f32.mrf.mxu1  ;;  %770 = vst.msk [vmem:[%s1716_s24 + $0x60] sm:$0xf] %vm745_vm3, %v1254_v18  ;;  %v1257_v34 = vpack.c.bf16 %v1803_v39, %v1803_v39 }
 0x112   : > { %757 = vst.msk [vmem:[%s1716_s24 + $0x2c] sm:$0xf] %vm745_vm3, %v1241_v38  ;;  %v1239_v47 = vpack.c.bf16 %v525_v44, %v525_v44  ;;  %v796_v48 = vsel %vm778_vm4, %v525_v44, 0.0  ;;  %v859_v49 = vmul.f32 %v525_v44, %v525_v44  ;;  %v903_v10 = vsel %vm778_vm4, %v861_v56, 0.0 }
 0x113   : > { %v898_v52 = vadd.f32 %v897_v46, %v896_v43  ;;  %v797_v53 = vadd.f32 %v796_v48, %v795_v42  ;;  %v1298_v54 = vpop.f32.mrf.mxu0  ;;  %v1819_v60 = vpop.f32.mrf.mxu1  ;;  %v1255_v37 = vpack.c.bf16 %v1811_v51, %v1811_v51  ;;  %v866_v42 = vmul.f32 %v1724_v28, %v1724_v28  ;;  %773 = vst.msk [vmem:[%s1716_s24 + $0x6c] sm:$0xf] %vm745_vm3, %v1257_v34 }
 0x114   : > { %755 = vst.msk [vmem:[%s1716_s24 + $0x24] sm:$0xf] %vm745_vm3, %v1239_v47  ;;  %v899_v57 = vsel %vm778_vm4, %v859_v49, 0.0  ;;  %v1244_v58 = vpack.c.bf16 %v1298_v54, %v1298_v54  ;;  %v864_v14 = vmul.f32 %v1298_v54, %v1298_v54  ;;  %v806_v29 = vsel %vm778_vm4, %v1298_v54, 0.0 }
 0x115   : > { %v799_v61 = vadd.f32 %v798_v55, %v797_v53  ;;  %v900_v62 = vadd.f32 %v899_v57, %v898_v52  ;;  %v538_v63 = vpop.f32.mrf.mxu0  ;;  %v1829_v9 = vpop.f32.mrf.mxu1  ;;  %v1260_v43 = vpack.c.bf16 %v1819_v60, %v1819_v60  ;;  %771 = vst.msk [vmem:[%s1716_s24 + $0x64] sm:$0xf] %vm745_vm3, %v1255_v37  ;;  %v810_v48 = vsel %vm778_vm4, %v1724_v28, 0.0 }
 0x116   : > { %760 = vst.msk [vmem:[%s1716_s24 + $0x38] sm:$0xf] %vm745_vm3, %v1244_v58  ;;  %v1242_v4 = vpack.c.bf16 %v538_v63, %v538_v63  ;;  %v862_v5 = vmul.f32 %v538_v63, %v538_v63  ;;  %v802_v11 = vsel %vm778_vm4, %v538_v63, 0.0  ;;  %v909_v38 = vsel %vm778_vm4, %v864_v14, 0.0 }
 0x117   : > { %v902_v6 = vadd.f32 %v901_v1, %v900_v62  ;;  %v801_v7 = vadd.f32 %v800_v3, %v799_v61  ;;  %v1299_v8 = vpop.f32.mrf.mxu0  ;;  %v1843_v27 = vpop.f32.mrf.mxu1  ;;  %v867_v49 = vmul.f32 %v1742_v41, %v1742_v41  ;;  %776 = vst.msk [vmem:[%s1716_s24 + $0x78] sm:$0xf] %vm745_vm3, %v1260_v43  ;;  %v1258_v52 = vpack.c.bf16 %v1829_v9, %v1829_v9 }
 0x118   : > { %758 = vst.msk [vmem:[%s1716_s24 + $0x30] sm:$0xf] %vm745_vm3, %v1242_v4  ;;  %v1245_v13 = vpack.c.bf16 %v1299_v8, %v1299_v8  ;;  %v905_v19 = vsel %vm778_vm4, %v862_v5, 0.0  ;;  %v865_v30 = vmul.f32 %v1299_v8, %v1299_v8  ;;  %v808_v40 = vsel %vm778_vm4, %v1299_v8, 0.0 }
 0x119   : > { %v803_v15 = vadd.f32 %v802_v11, %v801_v7  ;;  %v904_v16 = vadd.f32 %v903_v10, %v902_v6  ;;  %v541_v17 = vpop.f32.mrf.mxu0  ;;  %v1863_v46 = vpop.f32.mrf.mxu1  ;;  %v1261_v55 = vpack.c.bf16 %v1843_v27, %v1843_v27  ;;  %v868_v56 = vmul.f32 %v1718_v24, %v1718_v24  ;;  %774 = vst.msk [vmem:[%s1716_s24 + $0x70] sm:$0xf] %vm745_vm3, %v1258_v52 }
 0x11a   : > { %761 = vst.msk [vmem:[%s1716_s24 + $0x3c] sm:$0xf] %vm745_vm3, %v1245_v13  ;;  %v1243_v21 = vpack.c.bf16 %v541_v17, %v541_v17  ;;  %v804_v22 = vsel %vm778_vm4, %v541_v17, 0.0  ;;  %v863_v23 = vmul.f32 %v541_v17, %v541_v17  ;;  %v911_v47 = vsel %vm778_vm4, %v865_v30, 0.0 }
 0x11b   : > { %v906_v25 = vadd.f32 %v905_v19, %v904_v16  ;;  %v805_v26 = vadd.f32 %v804_v22, %v803_v15  ;;  %v913_v57 = vsel %vm778_vm4, %v866_v42, 0.0  ;;  %v812_v28 = vsel %vm778_vm4, %v1742_v41, 0.0  ;;  %777 = vst.msk [vmem:[%s1716_s24 + $0x7c] sm:$0xf] %vm745_vm3, %v1261_v55 }
 0x11c   : > { %759 = vst.msk [vmem:[%s1716_s24 + $0x34] sm:$0xf] %vm745_vm3, %v1243_v21  ;;  %v907_v32 = vsel %vm778_vm4, %v863_v23, 0.0  ;;  %v1259_v58 = vpack.c.bf16 %v1863_v46, %v1863_v46  ;;  %v814_v63 = vsel %vm778_vm4, %v1718_v24, 0.0  ;;  %v915_v1 = vsel %vm778_vm4, %v867_v49, 0.0 }
 0x11d   : > { %v807_v35 = vadd.f32 %v806_v29, %v805_v26  ;;  %v908_v36 = vadd.f32 %v907_v32, %v906_v25  ;;  %v917_v4 = vsel %vm778_vm4, %v868_v56, 0.0  ;;  %v816_v5 = vsel %vm778_vm4, %v1732_v33, 0.0 }
 0x11e   : > { %775 = vst.msk [vmem:[%s1716_s24 + $0x74] sm:$0xf] %vm745_vm3, %v1259_v58  ;;  %v870_v6 = vmul.f32 %v1763_v59, %v1763_v59  ;;  %v919_v24 = vsel %vm778_vm4, %v869_v0, 0.0  ;;  %v818_v10 = vsel %vm778_vm4, %v1763_v59, 0.0  ;;  %v871_v11 = vmul.f32 %v1779_v12, %v1779_v12  ;;  %s1442_s24 = scalar_lea.vmem %s1441_s22, 32 }
 0x11f   : > { %v809_v44 = vadd.f32 %v808_v40, %v807_v35  ;;  %v910_v45 = vadd.f32 %v909_v38, %v908_v36  ;;  %v872_v15 = vmul.f32 %v1753_v50, %v1753_v50  ;;  %v820_v16 = vsel %vm778_vm4, %v1779_v12, 0.0  ;;  %p1444_p5 = scmp.lt.s32.totalorder %s1442_s24, %s1436_s14 }
 0x120   : > { %v921_v33 = vsel %vm778_vm4, %v870_v6, 0.0  ;;  %v822_v19 = vsel %vm778_vm4, %v1753_v50, 0.0  ;;  %v873_v59 = vmul.f32 %v1771_v2, %v1771_v2  ;;  %v923_v21 = vsel %vm778_vm4, %v871_v11, 0.0 }
 0x121   : > { %v912_v53 = vadd.f32 %v911_v47, %v910_v45  ;;  %v811_v54 = vadd.f32 %v810_v48, %v809_v44  ;;  %v925_v25 = vsel %vm778_vm4, %v872_v15, 0.0  ;;  %v824_v26 = vsel %vm778_vm4, %v1771_v2, 0.0  ;;  %p1445_p6 = por %p1444_p5, %p1443_p3 }
 0x122   : > { %v874_v12 = vmul.f32 %v1795_v31, %v1795_v31  ;;  %v927_v32 = vsel %vm778_vm4, %v873_v59, 0.0  ;;  %v826_v50 = vsel %vm778_vm4, %v1795_v31, 0.0  ;;  %v875_v34 = vmul.f32 %v1811_v51, %v1811_v51 }
 0x123   : > { %v813_v61 = vadd.f32 %v812_v28, %v811_v54  ;;  %v914_v62 = vadd.f32 %v913_v57, %v912_v53  ;;  %v876_v37 = vmul.f32 %v1787_v20, %v1787_v20  ;;  %v828_v38 = vsel %vm778_vm4, %v1811_v51, 0.0  ;;  %p1446_p7 = pnand %p1445_p6, %p1439_p1 }
 0x124   : > { %v929_v2 = vsel %vm778_vm4, %v874_v12, 0.0  ;;  %v830_v43 = vsel %vm778_vm4, %v1787_v20, 0.0  ;;  %v877_v31 = vmul.f32 %v1803_v39, %v1803_v39  ;;  %v931_v44 = vsel %vm778_vm4, %v875_v34, 0.0 }
 0x125   : > { %v815_v41 = vadd.f32 %v814_v63, %v813_v61  ;;  %v916_v3 = vadd.f32 %v915_v1, %v914_v62  ;;  %v933_v48 = vsel %vm778_vm4, %v876_v37, 0.0  ;;  %v832_v49 = vsel %vm778_vm4, %v1803_v39, 0.0 }
 0x126   : > { %v878_v51 = vmul.f32 %v1829_v9, %v1829_v9  ;;  %v935_v54 = vsel %vm778_vm4, %v877_v31, 0.0  ;;  %v834_v20 = vsel %vm778_vm4, %v1829_v9, 0.0  ;;  %v879_v55 = vmul.f32 %v1863_v46, %v1863_v46 }
 0x127   : > { %v918_v7 = vadd.f32 %v917_v4, %v916_v3  ;;  %v817_v8 = vadd.f32 %v816_v5, %v815_v41  ;;  %v880_v28 = vmul.f32 %v1819_v60, %v1819_v60  ;;  %v836_v58 = vsel %vm778_vm4, %v1863_v46, 0.0 }
 0x128   : > { %v937_v39 = vsel %vm778_vm4, %v878_v51, 0.0  ;;  %v838_v63 = vsel %vm778_vm4, %v1819_v60, 0.0  ;;  %v881_v9 = vmul.f32 %v1843_v27, %v1843_v27  ;;  %v939_v0 = vsel %vm778_vm4, %v879_v55, 0.0 }
 0x129   : > { %v819_v13 = vadd.f32 %v818_v10, %v817_v8  ;;  %v920_v14 = vadd.f32 %v919_v24, %v918_v7  ;;  %v941_v3 = vsel %vm778_vm4, %v880_v28, 0.0  ;;  %v840_v4 = vsel %vm778_vm4, %v1843_v27, 0.0 }
 0x12a   : > { %v943_v6 = vsel %vm778_vm4, %v881_v9, 0.0 }
 0x12b   : > { %v922_v17 = vadd.f32 %v921_v33, %v920_v14  ;;  %v821_v18 = vadd.f32 %v820_v16, %v819_v13 }
 0x12d   : > { %v823_v22 = vadd.f32 %v822_v19, %v821_v18  ;;  %v924_v23 = vadd.f32 %v923_v21, %v922_v17 }
 0x12f   : > { %v926_v29 = vadd.f32 %v925_v25, %v924_v23  ;;  %v825_v30 = vadd.f32 %v824_v26, %v823_v22 }
 0x131   : > { %v827_v35 = vadd.f32 %v826_v50, %v825_v30  ;;  %v928_v36 = vadd.f32 %v927_v32, %v926_v29 }
 0x133   : > { %v930_v40 = vadd.f32 %v929_v2, %v928_v36  ;;  %v829_v42 = vadd.f32 %v828_v38, %v827_v35 }
 0x135   : > { %v831_v45 = vadd.f32 %v830_v43, %v829_v42  ;;  %v932_v47 = vadd.f32 %v931_v44, %v930_v40 }
 0x137   : > { %v934_v52 = vadd.f32 %v933_v48, %v932_v47  ;;  %v833_v53 = vadd.f32 %v832_v49, %v831_v45 }
 0x139   : > { %v835_v56 = vadd.f32 %v834_v20, %v833_v53  ;;  %v936_v57 = vadd.f32 %v935_v54, %v934_v52 }
 0x13b   : > { %v938_v61 = vadd.f32 %v937_v39, %v936_v57  ;;  %v837_v62 = vadd.f32 %v836_v58, %v835_v56 }
 0x13d   : > { %v839_v1 = vadd.f32 %v838_v63, %v837_v62  ;;  %v940_v41 = vadd.f32 %v939_v0, %v938_v61 }
 0x13f   : > { %v841_v46 = vadd.f32 %v840_v4, %v839_v1  ;;  %v942_v5 = vadd.f32 %v941_v3, %v940_v41 }
 0x141   : > { %v842_v60 = vrot.slane %v841_v46, 4  ;;  %v944_v7 = vadd.f32 %v943_v6, %v942_v5 }
 0x143   : > { %v843_v8 = vadd.f32 %v842_v60, %v841_v46  ;;  %v945_v24 = vrot.slane %v944_v7, 4 }
 0x145   : > { %v844_v10 = vrot.slane %v843_v8, 2  ;;  %v946_v11 = vadd.f32 %v945_v24, %v944_v7 }
 0x147   : > { %v845_v13 = vadd.f32 %v844_v10, %v843_v8  ;;  %v947_v14 = vrot.slane %v946_v11, 2 }
 0x149   : > { %v846_v15 = vrot.slane %v845_v13, 1  ;;  %v948_v27 = vadd.f32 %v947_v14, %v946_v11 }
 0x14b   : > { %v847_v33 = vadd.f32 %v846_v15, %v845_v13  ;;  %v949_v16 = vrot.slane %v948_v27, 1 }
 0x14d   : > { %849 = vst.msk [vmem:[%s253_s25] sm:$0x1] %vm848_vm5, %v847_v33  ;;  %v950_v17 = vadd.f32 %v949_v16, %v948_v27 }
 0x14e   : > { %1449 = shalt.err (!%p1446_p7)
}
 0x14f   : > { %s1450_s26 = scalar_lea.hbm %s1966_s11, 16  ;;  %s1454_s10 = scalar_lea.hbm %s2049_s3, 32 }
 0x150   : > { %p1451_p10 = scmp.ne.s32.totalorder %s1966_s11, %s1450_s26  ;;  %p1455_p2 = scmp.lt.s32.totalorder %s1966_s11, %s2049_s3 }
 0x151   : > { %p1456_p8 = scmp.lt.s32.totalorder %s1454_s10, %s1450_s26 }
 0x152   : > { %p1452_p4 = pnand %p1451_p10, %p1630_p9 }
 0x153   : > { %p1457_p12 = por %p1456_p8, %p1455_p2 }
 0x154   : > { %p1453_p13 = pneg %p1452_p4 }
 0x156   : > { %p1458_p0 = pnand %p1457_p12, %p1453_p13 }
 0x158   : > { %1461 = shalt.err (!%p1458_p0)
}
 0x159   : > { %1322 = dma.vmem_to_hbm [thread:$0]  (%p1630_p9), %s1968_s5, 16, %s1966_s11, %s963_s27   ;;  %951 = vst.msk [vmem:[%s259_s7] sm:$0x1] %vm848_vm5, %v950_v17 }
 0x15a   : > { %s967_s14 = scalar_lea.sflag [#allocation7], %s1663_s6  ;;  %s1462_s21 = scalar_lea.vmem %s1976_s8, 16 }
 0x15b   : > { %p1463_p1 = scmp.ne.s32.totalorder %s1976_s8, %s1462_s21  ;;  %s1553_s22 = smov [#allocation6]  }
 0x15c   : > { %s1466_s24 = sshll.u32 %s1553_s22, 4  ;;  %s1467_s24 = int_to_ptr.vmem [resolvable:$false] %s1466_s24 }
 0x15d   : > { %p1464_p3 = pnand %p1463_p1, %p1630_p9  ;;  %s1468_s26 = scalar_lea.vmem %s1467_s24, 32 }
 0x15e   : > { %p1469_p6 = scmp.lt.s32.totalorder %s1976_s8, %s1467_s24  ;;  %p1470_p7 = scmp.lt.s32.totalorder %s1468_s26, %s1462_s21 }
 0x15f   : > { %p1465_p5 = pneg %p1464_p3 }
 0x160   : > { %p1471_p10 = por %p1470_p7, %p1469_p6 }
 0x162   : > { %p1472_p4 = pnand %p1471_p10, %p1465_p5 }
 0x164   : > { %1475 = shalt.err (!%p1472_p4)
}
 0x165   : > { %s1476_s5 = scalar_lea.hbm %s1974_s13, 16  ;;  %s1480_s11 = scalar_lea.hbm %s2050_s4, 32 }
 0x166   : > { %p1477_p13 = scmp.ne.s32.totalorder %s1974_s13, %s1476_s5  ;;  %p1481_p12 = scmp.lt.s32.totalorder %s1974_s13, %s2050_s4 }
 0x167   : > { %p1482_p0 = scmp.lt.s32.totalorder %s1480_s11, %s1476_s5 }
 0x168   : > { %p1478_p2 = pnand %p1477_p13, %p1630_p9 }
 0x169   : > { %p1483_p1 = por %p1482_p0, %p1481_p12 }
 0x16a   : > { %p1479_p8 = pneg %p1478_p2 }
 0x16c   : > { %p1484_p3 = pnand %p1483_p1, %p1479_p8 }
 0x16e   : > { %1487 = shalt.err (!%p1484_p3)
}
 0x16f   : > { %1323 = dma.vmem_to_hbm [thread:$0]  (%p1630_p9), %s1976_s8, 16, %s1974_s13, %s967_s14  }
 0x170 PF: > { %s1023_s9 = sand.u32 1, %s1526_s15   ;;  %p2056_p5 = scmp.ge.s32.totalorder %s1546_s20, 2 }
 0x171   : > { %s1024_s10 = scalar_lea.sflag [#allocation4], %s1023_s9 }
 0x172   : > { %p1331_p6 = pnand %p2056_p5, %p1637_p11 }
 0x174   : > { %p1332_p7 = pneg %p1331_p6 }
 0x176   : > { %1517 = dma.done.wait (%p1332_p7), %s1024_s10, 16  }
 0x177   : > { %1519 = vsyncadd (%p1332_p7), %s1024_s10, 4294967280  ;;  %s1032_s18 = scalar_lea.sflag [#allocation7], %s1023_s9 }
 0x178   : > { %1521 = dma.done.wait (%p1332_p7), %s1032_s18, 16  }
 0x179   : > { %1523 = vsyncadd (%p1332_p7), %s1032_s18, 4294967280  ;;  %s24_s20 = sadd.s32 1, %s1546_s20   ;;  %s2057_s15 = smov %s1530_s16 }
 0x17a   : > { %p21_p10 = scmp.ge.s32.totalorder %s24_s20, 4   ;;  %s2058_s16 = smov %s1534_s17 }
 0x17b   : > { %s2059_s17 = smov %s1635_s29  ;;  %s2060_s18 = smov %s1542_s19 }
 0x17c   : > { %s2061_s19 = smov %s2063_s23  ;;  %23 = sbr.rel (!%p21_p10) target bundleno = 8 (0x8), region = 102 }
 0x181   :  { %1036 = vsyncpa [#allocation3], 1 }
 0x182   :  { %1038 = vsyncpa [#allocation3 + $0x1], 1 }
 0x183   :  { %1039 = vsyncpa [#allocation4], 1 }
 0x184   :  { %1041 = vsyncpa [#allocation4 + $0x1], 1 }
 0x185   :  { %1042 = vsyncpa [#allocation7], 1 }
 0x186   :  { %1044 = vsyncpa [#allocation7 + $0x1], 1 }

</bundles_post_ra>
